<compile_context>
chip_gen: v5e
topology: v5e:2x2
jax: 0.10.0
libtpu: 0.0.40
codegen_flags: <defaults>
</compile_context>

<pallas_src>
import functools

import jax
import jax.numpy as jnp
from jax.experimental import pallas as pl
from jax.experimental.pallas import tpu as pltpu


_INV_SQRT2 = 0.7071067811865476


def _gelu_exact(x):
    # PyTorch default nn.GELU() is the exact (erf-based) formulation.
    return 0.5 * x * (1.0 + jax.lax.erf(x * _INV_SQRT2))


def _bn_train_fused(x, gamma, beta, eps):
    """Training-mode BatchNorm1d on [B, C, L]; per-channel stats over (B, L).

    Single reduction pass (sum + sum-of-squares), then normalization is folded
    into one per-channel scale/shift FMA per element.
    """
    B, C, L = x.shape
    inv_n = 1.0 / (B * L)
    s = jnp.sum(x, axis=(0, 2), keepdims=True)           # [1, C, 1]
    ss = jnp.sum(x * x, axis=(0, 2), keepdims=True)      # [1, C, 1]
    mean = s * inv_n
    var = ss * inv_n - mean * mean                       # biased variance
    scale = gamma * jax.lax.rsqrt(var + eps)             # [1, C, 1] (EUP rsqrt)
    shift = beta - mean * scale                          # [1, C, 1]
    return x * scale + shift                             # 1 FMA / element


def convlayer_kernel(x_ref, dww_ref, dwb_ref, pww_ref, pwb_ref,
                     g1_ref, b1_ref, g2_ref, b2_ref, out_ref, *, eps):
    B, C, L = out_ref.shape
    K = dww_ref.shape[1]
    pad_left = (K - 1) // 2            # PyTorch 'same' padding split

    x = x_ref[...]                                        # [B, C, L] f32
    x2 = x.reshape(B * C, L)                              # lane-preserving view
    lane = jax.lax.broadcasted_iota(jnp.int32, (B * C, L), 1)

    # --- depthwise conv1d (groups=dim, padding='same') ----------------------
    # Taps are pure lane rotations + an edge mask: no padded 132-lane slices,
    # no extra VMEM copies.  K is small & static -> unrolled (broadcasts of
    # the per-channel weight columns are emitted once each).
    acc = jnp.broadcast_to(dwb_ref[...], (B, C, L))       # start from bias [C,1]
    for k in range(K):
        s = k - pad_left                                  # tap offset
        w_k = dww_ref[:, k:k + 1]                         # [C, 1]
        if s == 0:
            tap = x
        else:
            t2 = pltpu.roll(x2, (-s) % L, axis=1)         # t2[l] = x[(l+s) % L]
            if s > 0:
                t2 = jnp.where(lane < (L - s), t2, 0.0)   # zero wrapped tail
            else:
                t2 = jnp.where(lane >= (-s), t2, 0.0)     # zero wrapped head
            tap = t2.reshape(B, C, L)
        acc = acc + w_k * tap

    # --- GELU -> BatchNorm (train stats) -> residual add --------------------
    y = _bn_train_fused(_gelu_exact(acc), g1_ref[...], b1_ref[...], eps) + x

    # --- pointwise (1x1) conv: z[b,o,l] = sum_c W[o,c] * y[b,c,l] + b[o] -----
    # C is tiny (8): do it on the VPU as C unrolled broadcast-FMAs; an 8-wide
    # contraction would waste the MXU on fill/drain.  For C >= 128, fold the
    # batch into lanes ([C, B*L]) and use a single jnp.dot on the MXU.
    pw = pww_ref[...]                                     # [C_out, C_in]
    z = jnp.broadcast_to(pwb_ref[...], (B, C, L))         # start from bias
    for c in range(C):
        z = z + pw[:, c:c + 1][None] * y[:, c:c + 1, :]   # [1,C,1] * [B,1,L]

    # --- GELU -> BatchNorm ---------------------------------------------------
    out_ref[...] = _bn_train_fused(_gelu_exact(z), g2_ref[...], b2_ref[...], eps)


def convlayer_forward(x, dw_w, dw_b, pw_w, pw_b, g1, b1, g2, b2, *, eps=1e-5):
    """x: [B, C, L] float32. dw_w: [C, K]. Per-channel params are [C, 1]."""
    B, C, L = x.shape
    K = dw_w.shape[1]

    # Advisory cost hint for XLA's scheduler.
    flops = (2 * K + 2 * C + 24) * B * C * L
    transcendentals = 2 * B * C * L                       # two erf sweeps
    bytes_accessed = 4 * (2 * B * C * L + C * (K + C + 6))
    cost = pl.CostEstimate(flops=flops, transcendentals=transcendentals,
                           bytes_accessed=bytes_accessed)

    vmem = pl.BlockSpec(memory_space=pltpu.MemorySpace.VMEM)
    # TODO(synk): at realistic ConvMixer sizes (C in the hundreds, L in the
    # thousands) add a grid over L tiles with a two-pass (stats / normalize)
    # BatchNorm so the kernel fits v7x's 64 MiB VMEM and uses both
    # TensorCores; at these toy sizes a single resident program is fastest.
    return pl.pallas_call(
        functools.partial(convlayer_kernel, eps=eps),
        out_shape=jax.ShapeDtypeStruct((B, C, L), x.dtype),
        in_specs=[vmem] * 9,
        out_specs=vmem,
        compiler_params=pltpu.CompilerParams(
            vmem_limit_bytes=32 * 1024 * 1024),
        cost_estimate=cost,
    )(x, dw_w, dw_b, pw_w, pw_b, g1, b1, g2, b2)


# ---------------------------- pure-JAX reference ----------------------------
def convlayer_ref(x, dw_w, dw_b, pw_w, pw_b, g1, b1, g2, b2, eps=1e-5):
    B, C, L = x.shape
    K = dw_w.shape[1]
    left = (K - 1) // 2
    right = (K - 1) - left
    xpad = jnp.pad(x, ((0, 0), (0, 0), (left, right)))
    y = sum(dw_w[None, :, k:k + 1] * xpad[:, :, k:k + L] for k in range(K))
    y = y + dw_b[None]
    y = jax.nn.gelu(y, approximate=False)
    m = jnp.mean(y, axis=(0, 2), keepdims=True)
    v = jnp.mean((y - m) ** 2, axis=(0, 2), keepdims=True)
    y = g1[None] * (y - m) / jnp.sqrt(v + eps) + b1[None]
    y = y + x
    z = jnp.einsum('oc,bcl->bol', pw_w, y) + pw_b[None]
    z = jax.nn.gelu(z, approximate=False)
    m = jnp.mean(z, axis=(0, 2), keepdims=True)
    v = jnp.mean((z - m) ** 2, axis=(0, 2), keepdims=True)
    return g2[None] * (z - m) / jnp.sqrt(v + eps) + b2[None]


if __name__ == "__main__":
    B, C, L, K = 2, 8, 128, 5   # dim=8, kernel_size=5

    key = jax.random.PRNGKey(0)
    ks = jax.random.split(key, 9)
    x = jax.random.normal(ks[0], (B, C, L), jnp.float32)

    # Deterministic synthetic parameters (shapes follow the PyTorch module):
    dw_w = jax.random.normal(ks[1], (C, K), jnp.float32) * 0.3   # Conv1d(dim,dim,K,groups=dim) weight
    dw_b = jax.random.normal(ks[2], (C, 1), jnp.float32) * 0.1   # its bias
    pw_w = jax.random.normal(ks[3], (C, C), jnp.float32) * 0.3   # Conv1d(dim,dim,1) weight
    pw_b = jax.random.normal(ks[4], (C, 1), jnp.float32) * 0.1   # its bias
    g1 = 1.0 + 0.1 * jax.random.normal(ks[5], (C, 1), jnp.float32)  # BN1 gamma
    b1 = 0.1 * jax.random.normal(ks[6], (C, 1), jnp.float32)        # BN1 beta
    g2 = 1.0 + 0.1 * jax.random.normal(ks[7], (C, 1), jnp.float32)  # BN2 gamma
    b2 = 0.1 * jax.random.normal(ks[8], (C, 1), jnp.float32)        # BN2 beta

    out = convlayer_forward(x, dw_w, dw_b, pw_w, pw_b, g1, b1, g2, b2)
    out = jax.block_until_ready(out)

    ref = convlayer_ref(x, dw_w, dw_b, pw_w, pw_b, g1, b1, g2, b2)
    assert out.shape == (B, C, L)
    err = float(jnp.max(jnp.abs(out - ref)))
    assert jnp.allclose(out, ref, rtol=1e-4, atol=1e-4), err

    print("KERNEL_OK")
</pallas_src>

<mosaic_0001>
module attributes {stable_mosaic.version = 11 : i64} {
  func.func @convlayer_kernel(%arg0: memref<2x8x128xf32, #tpu.memory_space<vmem>>, %arg1: memref<8x5xf32, #tpu.memory_space<vmem>>, %arg2: memref<8x1xf32, #tpu.memory_space<vmem>>, %arg3: memref<8x8xf32, #tpu.memory_space<vmem>>, %arg4: memref<8x1xf32, #tpu.memory_space<vmem>>, %arg5: memref<8x1xf32, #tpu.memory_space<vmem>>, %arg6: memref<8x1xf32, #tpu.memory_space<vmem>>, %arg7: memref<8x1xf32, #tpu.memory_space<vmem>>, %arg8: memref<8x1xf32, #tpu.memory_space<vmem>>, %arg9: memref<2x8x128xf32, #tpu.memory_space<vmem>>) attributes {dimension_semantics = [], scalar_prefetch = 0 : i64, scratch_operands = 0 : i64, tpu.core_type = #tpu.core_type<tc>} {
    %c0 = arith.constant 0 : index
    %c0_0 = arith.constant 0 : index
    %c0_1 = arith.constant 0 : index
    %0 = vector.load %arg0[%c0, %c0_0, %c0_1] : memref<2x8x128xf32, #tpu.memory_space<vmem>>, vector<2x8x128xf32>
    %1 = vector.shape_cast %0 : vector<2x8x128xf32> to vector<16x128xf32>
    %2 = tpu.iota {dimensions = array<i32: 1>} : vector<16x128xi32>
    %c0_2 = arith.constant 0 : index
    %c0_3 = arith.constant 0 : index
    %3 = vector.load %arg2[%c0_2, %c0_3] : memref<8x1xf32, #tpu.memory_space<vmem>>, vector<8x1xf32>
    %4 = vector.shape_cast %3 : vector<8x1xf32> to vector<1x8x1xf32>
    %5 = vector.broadcast %4 : vector<1x8x1xf32> to vector<2x8x128xf32>
    %c0_4 = arith.constant 0 : index
    %c0_5 = arith.constant 0 : index
    %6 = vector.load %arg1[%c0_4, %c0_5] : memref<8x5xf32, #tpu.memory_space<vmem>>, vector<8x1xf32>
    %c2_i32 = arith.constant 2 : i32
    %7 = tpu.dynamic_rotate %1 by %c2_i32 dim 1 : vector<16x128xf32>, i32 -> vector<16x128xf32>
    %c2_i32_6 = arith.constant 2 : i32
    %8 = vector.broadcast %c2_i32_6 : i32 to vector<16x128xi32>
    %9 = arith.cmpi sge, %2, %8 : vector<16x128xi32>
    %cst = arith.constant 0.000000e+00 : f32
    %10 = vector.broadcast %cst : f32 to vector<16x128xf32>
    %11 = arith.select %9, %7, %10 : vector<16x128xi1>, vector<16x128xf32>
    %12 = vector.shape_cast %11 : vector<16x128xf32> to vector<2x8x128xf32>
    %13 = vector.shape_cast %6 : vector<8x1xf32> to vector<1x8x1xf32>
    %14 = vector.broadcast %13 : vector<1x8x1xf32> to vector<2x8x128xf32>
    %15 = arith.mulf %14, %12 : vector<2x8x128xf32>
    %16 = arith.addf %5, %15 : vector<2x8x128xf32>
    %c0_7 = arith.constant 0 : index
    %c1 = arith.constant 1 : index
    %17 = vector.load %arg1[%c0_7, %c1] : memref<8x5xf32, #tpu.memory_space<vmem>>, vector<8x1xf32>
    %c1_i32 = arith.constant 1 : i32
    %18 = tpu.dynamic_rotate %1 by %c1_i32 dim 1 : vector<16x128xf32>, i32 -> vector<16x128xf32>
    %c1_i32_8 = arith.constant 1 : i32
    %19 = vector.broadcast %c1_i32_8 : i32 to vector<16x128xi32>
    %20 = arith.cmpi sge, %2, %19 : vector<16x128xi32>
    %cst_9 = arith.constant 0.000000e+00 : f32
    %21 = vector.broadcast %cst_9 : f32 to vector<16x128xf32>
    %22 = arith.select %20, %18, %21 : vector<16x128xi1>, vector<16x128xf32>
    %23 = vector.shape_cast %22 : vector<16x128xf32> to vector<2x8x128xf32>
    %24 = vector.shape_cast %17 : vector<8x1xf32> to vector<1x8x1xf32>
    %25 = vector.broadcast %24 : vector<1x8x1xf32> to vector<2x8x128xf32>
    %26 = arith.mulf %25, %23 : vector<2x8x128xf32>
    %27 = arith.addf %16, %26 : vector<2x8x128xf32>
    %c0_10 = arith.constant 0 : index
    %c2 = arith.constant 2 : index
    %28 = vector.load %arg1[%c0_10, %c2] : memref<8x5xf32, #tpu.memory_space<vmem>>, vector<8x1xf32>
    %29 = vector.shape_cast %28 : vector<8x1xf32> to vector<1x8x1xf32>
    %30 = vector.broadcast %29 : vector<1x8x1xf32> to vector<2x8x128xf32>
    %31 = arith.mulf %30, %0 : vector<2x8x128xf32>
    %32 = arith.addf %27, %31 : vector<2x8x128xf32>
    %c0_11 = arith.constant 0 : index
    %c3 = arith.constant 3 : index
    %33 = vector.load %arg1[%c0_11, %c3] : memref<8x5xf32, #tpu.memory_space<vmem>>, vector<8x1xf32>
    %c127_i32 = arith.constant 127 : i32
    %34 = tpu.dynamic_rotate %1 by %c127_i32 dim 1 : vector<16x128xf32>, i32 -> vector<16x128xf32>
    %c127_i32_12 = arith.constant 127 : i32
    %35 = vector.broadcast %c127_i32_12 : i32 to vector<16x128xi32>
    %36 = arith.cmpi slt, %2, %35 : vector<16x128xi32>
    %cst_13 = arith.constant 0.000000e+00 : f32
    %37 = vector.broadcast %cst_13 : f32 to vector<16x128xf32>
    %38 = arith.select %36, %34, %37 : vector<16x128xi1>, vector<16x128xf32>
    %39 = vector.shape_cast %38 : vector<16x128xf32> to vector<2x8x128xf32>
    %40 = vector.shape_cast %33 : vector<8x1xf32> to vector<1x8x1xf32>
    %41 = vector.broadcast %40 : vector<1x8x1xf32> to vector<2x8x128xf32>
    %42 = arith.mulf %41, %39 : vector<2x8x128xf32>
    %43 = arith.addf %32, %42 : vector<2x8x128xf32>
    %c0_14 = arith.constant 0 : index
    %c4 = arith.constant 4 : index
    %44 = vector.load %arg1[%c0_14, %c4] : memref<8x5xf32, #tpu.memory_space<vmem>>, vector<8x1xf32>
    %c126_i32 = arith.constant 126 : i32
    %45 = tpu.dynamic_rotate %1 by %c126_i32 dim 1 : vector<16x128xf32>, i32 -> vector<16x128xf32>
    %c126_i32_15 = arith.constant 126 : i32
    %46 = vector.broadcast %c126_i32_15 : i32 to vector<16x128xi32>
    %47 = arith.cmpi slt, %2, %46 : vector<16x128xi32>
    %cst_16 = arith.constant 0.000000e+00 : f32
    %48 = vector.broadcast %cst_16 : f32 to vector<16x128xf32>
    %49 = arith.select %47, %45, %48 : vector<16x128xi1>, vector<16x128xf32>
    %50 = vector.shape_cast %49 : vector<16x128xf32> to vector<2x8x128xf32>
    %51 = vector.shape_cast %44 : vector<8x1xf32> to vector<1x8x1xf32>
    %52 = vector.broadcast %51 : vector<1x8x1xf32> to vector<2x8x128xf32>
    %53 = arith.mulf %52, %50 : vector<2x8x128xf32>
    %54 = arith.addf %43, %53 : vector<2x8x128xf32>
    %cst_17 = arith.constant 5.000000e-01 : f32
    %55 = vector.broadcast %cst_17 : f32 to vector<2x8x128xf32>
    %56 = arith.mulf %55, %54 : vector<2x8x128xf32>
    %cst_18 = arith.constant 0.707106769 : f32
    %57 = vector.broadcast %cst_18 : f32 to vector<2x8x128xf32>
    %58 = arith.mulf %54, %57 : vector<2x8x128xf32>
    %59 = math.erf %58 : vector<2x8x128xf32>
    %cst_19 = arith.constant 1.000000e+00 : f32
    %60 = vector.broadcast %cst_19 : f32 to vector<2x8x128xf32>
    %61 = arith.addf %60, %59 : vector<2x8x128xf32>
    %62 = arith.mulf %56, %61 : vector<2x8x128xf32>
    %c0_20 = arith.constant 0 : index
    %c0_21 = arith.constant 0 : index
    %63 = vector.load %arg5[%c0_20, %c0_21] : memref<8x1xf32, #tpu.memory_space<vmem>>, vector<8x1xf32>
    %c0_22 = arith.constant 0 : index
    %c0_23 = arith.constant 0 : index
    %64 = vector.load %arg6[%c0_22, %c0_23] : memref<8x1xf32, #tpu.memory_space<vmem>>, vector<8x1xf32>
    %cst_24 = arith.constant dense<0.000000e+00> : vector<8xf32>
    %65 = vector.multi_reduction <add>, %62, %cst_24 [0, 2] : vector<2x8x128xf32> to vector<8xf32>
    %66 = vector.shape_cast %65 : vector<8xf32> to vector<1x8x1xf32>
    %67 = arith.mulf %62, %62 : vector<2x8x128xf32>
    %cst_25 = arith.constant dense<0.000000e+00> : vector<8xf32>
    %68 = vector.multi_reduction <add>, %67, %cst_25 [0, 2] : vector<2x8x128xf32> to vector<8xf32>
    %69 = vector.shape_cast %68 : vector<8xf32> to vector<1x8x1xf32>
    %cst_26 = arith.constant 3.906250e-03 : f32
    %70 = vector.broadcast %cst_26 : f32 to vector<1x8x1xf32>
    %71 = arith.mulf %66, %70 : vector<1x8x1xf32>
    %cst_27 = arith.constant 3.906250e-03 : f32
    %72 = vector.broadcast %cst_27 : f32 to vector<1x8x1xf32>
    %73 = arith.mulf %69, %72 : vector<1x8x1xf32>
    %74 = arith.mulf %71, %71 : vector<1x8x1xf32>
    %75 = arith.subf %73, %74 : vector<1x8x1xf32>
    %cst_28 = arith.constant 9.99999974E-6 : f32
    %76 = vector.broadcast %cst_28 : f32 to vector<1x8x1xf32>
    %77 = arith.addf %75, %76 : vector<1x8x1xf32>
    %78 = math.rsqrt %77 : vector<1x8x1xf32>
    %79 = vector.shape_cast %63 : vector<8x1xf32> to vector<1x8x1xf32>
    %80 = arith.mulf %79, %78 : vector<1x8x1xf32>
    %81 = arith.mulf %71, %80 : vector<1x8x1xf32>
    %82 = vector.shape_cast %64 : vector<8x1xf32> to vector<1x8x1xf32>
    %83 = arith.subf %82, %81 : vector<1x8x1xf32>
    %84 = vector.broadcast %80 : vector<1x8x1xf32> to vector<2x8x128xf32>
    %85 = arith.mulf %62, %84 : vector<2x8x128xf32>
    %86 = vector.broadcast %83 : vector<1x8x1xf32> to vector<2x8x128xf32>
    %87 = arith.addf %85, %86 : vector<2x8x128xf32>
    %88 = arith.addf %87, %0 : vector<2x8x128xf32>
    %c0_29 = arith.constant 0 : index
    %c0_30 = arith.constant 0 : index
    %89 = vector.load %arg3[%c0_29, %c0_30] : memref<8x8xf32, #tpu.memory_space<vmem>>, vector<8x8xf32>
    %c0_31 = arith.constant 0 : index
    %c0_32 = arith.constant 0 : index
    %90 = vector.load %arg4[%c0_31, %c0_32] : memref<8x1xf32, #tpu.memory_space<vmem>>, vector<8x1xf32>
    %91 = vector.shape_cast %90 : vector<8x1xf32> to vector<1x8x1xf32>
    %92 = vector.broadcast %91 : vector<1x8x1xf32> to vector<2x8x128xf32>
    %93 = vector.extract_strided_slice %89 {offsets = [0, 0], sizes = [8, 1], strides = [1, 1]} : vector<8x8xf32> to vector<8x1xf32>
    %94 = vector.shape_cast %93 : vector<8x1xf32> to vector<1x8x1xf32>
    %95 = vector.extract_strided_slice %88 {offsets = [0, 0, 0], sizes = [2, 1, 128], strides = [1, 1, 1]} : vector<2x8x128xf32> to vector<2x1x128xf32>
    %96 = vector.broadcast %94 : vector<1x8x1xf32> to vector<2x8x128xf32>
    %97 = vector.broadcast %95 : vector<2x1x128xf32> to vector<2x8x128xf32>
    %98 = arith.mulf %96, %97 : vector<2x8x128xf32>
    %99 = arith.addf %92, %98 : vector<2x8x128xf32>
    %100 = vector.extract_strided_slice %89 {offsets = [0, 1], sizes = [8, 1], strides = [1, 1]} : vector<8x8xf32> to vector<8x1xf32>
    %101 = vector.shape_cast %100 : vector<8x1xf32> to vector<1x8x1xf32>
    %102 = vector.extract_strided_slice %88 {offsets = [0, 1, 0], sizes = [2, 1, 128], strides = [1, 1, 1]} : vector<2x8x128xf32> to vector<2x1x128xf32>
    %103 = vector.broadcast %101 : vector<1x8x1xf32> to vector<2x8x128xf32>
    %104 = vector.broadcast %102 : vector<2x1x128xf32> to vector<2x8x128xf32>
    %105 = arith.mulf %103, %104 : vector<2x8x128xf32>
    %106 = arith.addf %99, %105 : vector<2x8x128xf32>
    %107 = vector.extract_strided_slice %89 {offsets = [0, 2], sizes = [8, 1], strides = [1, 1]} : vector<8x8xf32> to vector<8x1xf32>
    %108 = vector.shape_cast %107 : vector<8x1xf32> to vector<1x8x1xf32>
    %109 = vector.extract_strided_slice %88 {offsets = [0, 2, 0], sizes = [2, 1, 128], strides = [1, 1, 1]} : vector<2x8x128xf32> to vector<2x1x128xf32>
    %110 = vector.broadcast %108 : vector<1x8x1xf32> to vector<2x8x128xf32>
    %111 = vector.broadcast %109 : vector<2x1x128xf32> to vector<2x8x128xf32>
    %112 = arith.mulf %110, %111 : vector<2x8x128xf32>
    %113 = arith.addf %106, %112 : vector<2x8x128xf32>
    %114 = vector.extract_strided_slice %89 {offsets = [0, 3], sizes = [8, 1], strides = [1, 1]} : vector<8x8xf32> to vector<8x1xf32>
    %115 = vector.shape_cast %114 : vector<8x1xf32> to vector<1x8x1xf32>
    %116 = vector.extract_strided_slice %88 {offsets = [0, 3, 0], sizes = [2, 1, 128], strides = [1, 1, 1]} : vector<2x8x128xf32> to vector<2x1x128xf32>
    %117 = vector.broadcast %115 : vector<1x8x1xf32> to vector<2x8x128xf32>
    %118 = vector.broadcast %116 : vector<2x1x128xf32> to vector<2x8x128xf32>
    %119 = arith.mulf %117, %118 : vector<2x8x128xf32>
    %120 = arith.addf %113, %119 : vector<2x8x128xf32>
    %121 = vector.extract_strided_slice %89 {offsets = [0, 4], sizes = [8, 1], strides = [1, 1]} : vector<8x8xf32> to vector<8x1xf32>
    %122 = vector.shape_cast %121 : vector<8x1xf32> to vector<1x8x1xf32>
    %123 = vector.extract_strided_slice %88 {offsets = [0, 4, 0], sizes = [2, 1, 128], strides = [1, 1, 1]} : vector<2x8x128xf32> to vector<2x1x128xf32>
    %124 = vector.broadcast %122 : vector<1x8x1xf32> to vector<2x8x128xf32>
    %125 = vector.broadcast %123 : vector<2x1x128xf32> to vector<2x8x128xf32>
    %126 = arith.mulf %124, %125 : vector<2x8x128xf32>
    %127 = arith.addf %120, %126 : vector<2x8x128xf32>
    %128 = vector.extract_strided_slice %89 {offsets = [0, 5], sizes = [8, 1], strides = [1, 1]} : vector<8x8xf32> to vector<8x1xf32>
    %129 = vector.shape_cast %128 : vector<8x1xf32> to vector<1x8x1xf32>
    %130 = vector.extract_strided_slice %88 {offsets = [0, 5, 0], sizes = [2, 1, 128], strides = [1, 1, 1]} : vector<2x8x128xf32> to vector<2x1x128xf32>
    %131 = vector.broadcast %129 : vector<1x8x1xf32> to vector<2x8x128xf32>
    %132 = vector.broadcast %130 : vector<2x1x128xf32> to vector<2x8x128xf32>
    %133 = arith.mulf %131, %132 : vector<2x8x128xf32>
    %134 = arith.addf %127, %133 : vector<2x8x128xf32>
    %135 = vector.extract_strided_slice %89 {offsets = [0, 6], sizes = [8, 1], strides = [1, 1]} : vector<8x8xf32> to vector<8x1xf32>
    %136 = vector.shape_cast %135 : vector<8x1xf32> to vector<1x8x1xf32>
    %137 = vector.extract_strided_slice %88 {offsets = [0, 6, 0], sizes = [2, 1, 128], strides = [1, 1, 1]} : vector<2x8x128xf32> to vector<2x1x128xf32>
    %138 = vector.broadcast %136 : vector<1x8x1xf32> to vector<2x8x128xf32>
    %139 = vector.broadcast %137 : vector<2x1x128xf32> to vector<2x8x128xf32>
    %140 = arith.mulf %138, %139 : vector<2x8x128xf32>
    %141 = arith.addf %134, %140 : vector<2x8x128xf32>
    %142 = vector.extract_strided_slice %89 {offsets = [0, 7], sizes = [8, 1], strides = [1, 1]} : vector<8x8xf32> to vector<8x1xf32>
    %143 = vector.shape_cast %142 : vector<8x1xf32> to vector<1x8x1xf32>
    %144 = vector.extract_strided_slice %88 {offsets = [0, 7, 0], sizes = [2, 1, 128], strides = [1, 1, 1]} : vector<2x8x128xf32> to vector<2x1x128xf32>
    %145 = vector.broadcast %143 : vector<1x8x1xf32> to vector<2x8x128xf32>
    %146 = vector.broadcast %144 : vector<2x1x128xf32> to vector<2x8x128xf32>
    %147 = arith.mulf %145, %146 : vector<2x8x128xf32>
    %148 = arith.addf %141, %147 : vector<2x8x128xf32>
    %cst_33 = arith.constant 5.000000e-01 : f32
    %149 = vector.broadcast %cst_33 : f32 to vector<2x8x128xf32>
    %150 = arith.mulf %149, %148 : vector<2x8x128xf32>
    %cst_34 = arith.constant 0.707106769 : f32
    %151 = vector.broadcast %cst_34 : f32 to vector<2x8x128xf32>
    %152 = arith.mulf %148, %151 : vector<2x8x128xf32>
    %153 = math.erf %152 : vector<2x8x128xf32>
    %cst_35 = arith.constant 1.000000e+00 : f32
    %154 = vector.broadcast %cst_35 : f32 to vector<2x8x128xf32>
    %155 = arith.addf %154, %153 : vector<2x8x128xf32>
    %156 = arith.mulf %150, %155 : vector<2x8x128xf32>
    %c0_36 = arith.constant 0 : index
    %c0_37 = arith.constant 0 : index
    %157 = vector.load %arg7[%c0_36, %c0_37] : memref<8x1xf32, #tpu.memory_space<vmem>>, vector<8x1xf32>
    %c0_38 = arith.constant 0 : index
    %c0_39 = arith.constant 0 : index
    %158 = vector.load %arg8[%c0_38, %c0_39] : memref<8x1xf32, #tpu.memory_space<vmem>>, vector<8x1xf32>
    %cst_40 = arith.constant dense<0.000000e+00> : vector<8xf32>
    %159 = vector.multi_reduction <add>, %156, %cst_40 [0, 2] : vector<2x8x128xf32> to vector<8xf32>
    %160 = vector.shape_cast %159 : vector<8xf32> to vector<1x8x1xf32>
    %161 = arith.mulf %156, %156 : vector<2x8x128xf32>
    %cst_41 = arith.constant dense<0.000000e+00> : vector<8xf32>
    %162 = vector.multi_reduction <add>, %161, %cst_41 [0, 2] : vector<2x8x128xf32> to vector<8xf32>
    %163 = vector.shape_cast %162 : vector<8xf32> to vector<1x8x1xf32>
    %cst_42 = arith.constant 3.906250e-03 : f32
    %164 = vector.broadcast %cst_42 : f32 to vector<1x8x1xf32>
    %165 = arith.mulf %160, %164 : vector<1x8x1xf32>
    %cst_43 = arith.constant 3.906250e-03 : f32
    %166 = vector.broadcast %cst_43 : f32 to vector<1x8x1xf32>
    %167 = arith.mulf %163, %166 : vector<1x8x1xf32>
    %168 = arith.mulf %165, %165 : vector<1x8x1xf32>
    %169 = arith.subf %167, %168 : vector<1x8x1xf32>
    %cst_44 = arith.constant 9.99999974E-6 : f32
    %170 = vector.broadcast %cst_44 : f32 to vector<1x8x1xf32>
    %171 = arith.addf %169, %170 : vector<1x8x1xf32>
    %172 = math.rsqrt %171 : vector<1x8x1xf32>
    %173 = vector.shape_cast %157 : vector<8x1xf32> to vector<1x8x1xf32>
    %174 = arith.mulf %173, %172 : vector<1x8x1xf32>
    %175 = arith.mulf %165, %174 : vector<1x8x1xf32>
    %176 = vector.shape_cast %158 : vector<8x1xf32> to vector<1x8x1xf32>
    %177 = arith.subf %176, %175 : vector<1x8x1xf32>
    %178 = vector.broadcast %174 : vector<1x8x1xf32> to vector<2x8x128xf32>
    %179 = arith.mulf %156, %178 : vector<2x8x128xf32>
    %180 = vector.broadcast %177 : vector<1x8x1xf32> to vector<2x8x128xf32>
    %181 = arith.addf %179, %180 : vector<2x8x128xf32>
    %c0_45 = arith.constant 0 : index
    %c0_46 = arith.constant 0 : index
    %c0_47 = arith.constant 0 : index
    %182 = vector.load %arg9[%c0_45, %c0_46, %c0_47] : memref<2x8x128xf32, #tpu.memory_space<vmem>>, vector<2x8x128xf32>
    tpu.vector_store %arg9[%c0_45, %c0_46, %c0_47], %181 {strides = array<i32>} : memref<2x8x128xf32, #tpu.memory_space<vmem>>, vector<2x8x128xf32>,
    return
  }
}

</mosaic_0001>

<bundles_post_ra>
// kernel: tpu_custom_call.1
= control target key start
LH: loop header
LB: loop body
LE: loop exit
PB: predicated region body
PF: predicated region fallthrough
CT: control target
= control target key end

     0   :  { %v556_v2 = vmov 0   ;;  %s557_s13 = smov 2   ;;  %v558_v4 = vmov 1   ;;  %s729_s0 = inlined_call_operand.vmem [shape: f32[2,8,128], index: 0, kind: input, shape index: {}]   ;;  %s730_s1 = inlined_call_operand.vmem [shape: f32[8,5], index: 1, kind: input, shape index: {}]   ;;  %s731_s2 = inlined_call_operand.vmem [shape: f32[8,1], index: 2, kind: input, shape index: {}]   ;;  %s732_s3 = inlined_call_operand.vmem [shape: f32[8,8], index: 3, kind: input, shape index: {}]   ;;  %s733_s4 = inlined_call_operand.vmem [shape: f32[8,1], index: 4, kind: input, shape index: {}]   ;;  %s734_s5 = inlined_call_operand.vmem [shape: f32[8,1], index: 5, kind: input, shape index: {}]   ;;  %s735_s6 = inlined_call_operand.vmem [shape: f32[8,1], index: 6, kind: input, shape index: {}]   ;;  %s736_s7 = inlined_call_operand.vmem [shape: f32[8,1], index: 7, kind: input, shape index: {}]   ;;  %s737_s8 = inlined_call_operand.vmem [shape: f32[8,1], index: 8, kind: input, shape index: {}]   ;;  %s738_s9 = inlined_call_operand.hbm [shape: f32[2,8,128], index: 9, kind: output, shape index: {}]  }
   0x1   :  { %v624_v0 = vld [vmem:[%s729_s0] sm:$0xff]  ;;  %502 = vset.pattern.permute.xlu1 %v556_v2  ;;  %v634_v3 = vld [vmem:[%s729_s0 + $0x8] sm:$0xff]  ;;  %504 = vset.pattern.permute.xlu0 %v558_v4 }
   0x2   :  { %v43_v1 = vld [vmem:[%s730_s1] sm:$0xff]  ;;  %44 = vrot.lane.b32.xlu0 %v624_v0, %s557_s13 }
   0x3   :  { %53 = vperm.xlu1 %502, %v43_v1  }
   0x4   :  { %14 = vsyncpa [#allocation3], 0  ;;  %s559_s16 = smov 1   ;;  %503 = vset.pattern.permute.xlu2 %v556_v2  ;;  %v37_v5 = vld [vmem:[%s731_s2] sm:$0xff]  ;;  %v560_v6 = vmov 2   ;;  %s561_s0 = smov 127   ;;  %v35_v11 = vlaneseq }
   0x5   :  { %62 = vrot.lane.b32.xlu2 %v634_v3, %s559_s16  ;;  %v562_v7 = vmov 3   ;;  %s563_s18 = smov 126   ;;  %v564_v8 = vmov 4   ;;  %s568_s26 = smov [#allocation2]  }
   0x6   :  { %v36_v14 = vand.u32 127, %v35_v11  ;;  %s469_s27 = sshll.u32 %s568_s26, 4  ;;  %s471_s30 = sshll.u32 %s738_s9, 4  ;;  %s470_s27 = int_to_ptr.vmem [resolvable:$true] %s469_s27  ;;  %s472_s30 = int_to_ptr.hbm [resolvable:$true] %s471_s30 }
   0x8   :  { %vm48_vm0 = vcmp.ge.s32.totalorder %v36_v14, 2  ;;  %vm64_vm1 = vcmp.ge.s32.totalorder %v36_v14, 1  ;;  %vm87_vm2 = vcmp.lt.s32.totalorder %v36_v14, 127  ;;  %vm102_vm3 = vcmp.lt.s32.totalorder %v36_v14, 126 }
   0xa   :  { %46 = vrot.lane.b32.xlu0 %v634_v3, %s557_s13 }
   0xb   :  { %60 = vrot.lane.b32.xlu1 %v624_v0, %s559_s16 }
   0xc   :  { %505 = vset.pattern.permute.xlu1 %v560_v6 }
   0xd   :  { %40 = vperm.xlu2 %503, %v37_v5  }
  0x12   :  { %68 = vperm.xlu0 %504, %v43_v1  }
  0x13   :  { %76 = vperm.xlu1 %505, %v43_v1  }
  0x15   :  { %83 = vrot.lane.b32.xlu2 %v624_v0, %s561_s0 }
  0x16   :  { %506 = vset.pattern.permute.xlu2 %v562_v7 }
  0x1a   :  { %98 = vrot.lane.b32.xlu0 %v624_v0, %s563_s18 }
  0x1b   :  { %85 = vrot.lane.b32.xlu1 %v634_v3, %s561_s0  ;;  %511 = vset.pattern.permute.xlu0 %v562_v7 }
  0x1c   :  { %512 = vset.pattern.permute.xlu1 %v564_v8 }
  0x1d   :  { %91 = vperm.xlu2 %506, %v43_v1  }
  0x23   :  { %100 = vrot.lane.b32.xlu1 %v634_v3, %s563_s18 }
  0x25   :  { %507 = vset.pattern.permute.xlu2 %v564_v8 }
  0x26   :  { %106 = vperm.xlu2 %507, %v43_v1  }
  0x2e   :  { %508 = vset.pattern.permute.xlu2 %v556_v2 }
  0x5f   :  { %v63_v9 = vpop.permute.xlu2 %62 }
  0x60   :  { %v66_v33 = vsel %vm64_vm1, %v63_v9, 0.0 }
  0x67   :  { %v41_v10 = vpop.permute.xlu2 %40 }
  0x6f   :  { %v84_v15 = vpop.permute.xlu2 %83 }
  0x70   :  { %v88_v29 = vsel %vm87_vm2, %v84_v15, 0.0 }
  0x74   :  { %v45_v12 = vpop.permute.xlu0 %44 }
  0x75   :  { %v54_v13 = vpop.permute.xlu1 %53  ;;  %v49_v18 = vsel %vm48_vm0, %v45_v12, 0.0 }
  0x76   :  { %v56_v19 = vmul.f32 %v54_v13, %v49_v18 }
  0x77   :  { %v92_v20 = vpop.permute.xlu2 %91 }
  0x78   :  { %v58_v23 = vadd.f32 %v56_v19, %v41_v10  ;;  %v94_v34 = vmul.f32 %v92_v20, %v88_v29 }
  0x7c   :  { %v47_v16 = vpop.permute.xlu0 %46 }
  0x7d   :  { %v61_v17 = vpop.permute.xlu1 %60  ;;  %v50_v28 = vsel %vm48_vm0, %v47_v16, 0.0 }
  0x7e   :  { %v65_v21 = vsel %vm64_vm1, %v61_v17, 0.0  ;;  %v57_v31 = vmul.f32 %v54_v13, %v50_v28 }
  0x80   :  { %v107_v32 = vpop.permute.xlu2 %106  ;;  %v59_v41 = vadd.f32 %v57_v31, %v41_v10 }
  0x84   :  { %v69_v22 = vpop.permute.xlu0 %68 }
  0x85   :  { %v71_v24 = vmul.f32 %v69_v22, %v65_v21  ;;  %v77_v25 = vpop.permute.xlu1 %76  ;;  %v72_v36 = vmul.f32 %v69_v22, %v66_v33 }
  0x86   :  { %v79_v26 = vmul.f32 %v77_v25, %v624_v0  ;;  %v80_v45 = vmul.f32 %v77_v25, %v634_v3 }
  0x87   :  { %v73_v27 = vadd.f32 %v71_v24, %v58_v23  ;;  %v74_v44 = vadd.f32 %v72_v36, %v59_v41 }
  0x89   :  { %v81_v30 = vadd.f32 %v79_v26, %v73_v27  ;;  %v82_v49 = vadd.f32 %v80_v45, %v74_v44 }
  0x8b   :  { %v96_v39 = vadd.f32 %v94_v34, %v81_v30  ;;  %v673_v34 = vld [vmem:[%s732_s3] sm:$0xff] }
  0x8c   :  { %v99_v35 = vpop.permute.xlu0 %98  ;;  %254 = vperm.xlu2 %508, %v673_v34  }
  0x8d   :  { %v103_v37 = vsel %vm102_vm3, %v99_v35, 0.0  ;;  %v86_v38 = vpop.permute.xlu1 %85 }
  0x8e   :  { %v109_v40 = vmul.f32 %v107_v32, %v103_v37  ;;  %v89_v43 = vsel %vm87_vm2, %v86_v38, 0.0 }
  0x8f   :  { %v95_v47 = vmul.f32 %v92_v20, %v89_v43 }
  0x90   :  { %v653_v42 = vadd.f32 %v109_v40, %v96_v39 }
  0x91   :  { %v97_v53 = vadd.f32 %v95_v47, %v82_v49  ;;  %v246_v47 = vld [vmem:[%s733_s4] sm:$0xff] }
  0x92   :  { %v658_v46 = vmul.f32 0.70710677, %v653_v42 }
  0x94   :  { %v117_v48 = vmul.f32 %v658_v46, %v658_v46  ;;  %249 = vperm.xlu2 %508, %v246_v47  }
  0x95   :  { %v101_v50 = vpop.permute.xlu1 %100 }
  0x96   :  { %v118_v51 = vmin.f32 %v117_v48, 16.0  ;;  %v104_v52 = vsel %vm102_vm3, %v101_v50, 0.0 }
  0x97   :  { %v110_v54 = vmul.f32 %v107_v32, %v104_v52 }
  0x98   :  { %v119_v55 = vmul.f32 2.1237322e-06, %v118_v51  ;;  %v130_v56 = vmul.f32 3.8918573e-05, %v118_v51 }
  0x99   :  { %v663_v57 = vadd.f32 %v110_v54, %v97_v53 }
  0x9a   :  { %v120_v58 = vadd.f32 0.00028619796, %v119_v55  ;;  %v131_v59 = vadd.f32 0.001143296, %v130_v56 }
  0x9b   :  { %v666_v60 = vmul.f32 0.70710677, %v663_v57 }
  0x9c   :  { %v121_v61 = vmul.f32 %v120_v58, %v118_v51  ;;  %v132_v62 = vmul.f32 %v131_v59, %v118_v51  ;;  %509 = vset.pattern.permute.xlu2 %v558_v4 }
  0x9d   :  { %v157_v63 = vmul.f32 %v666_v60, %v666_v60  ;;  %264 = vperm.xlu2 %509, %v673_v34  }
  0x9e   :  { %v133_v1 = vadd.f32 0.014752088, %v132_v62  ;;  %v122_v7 = vadd.f32 0.0036580483, %v121_v61 }
  0x9f   :  { %v158_v5 = vmin.f32 %v157_v63, 16.0 }
  0xa0   :  { %v134_v8 = vmul.f32 %v133_v1, %v118_v51  ;;  %v123_v14 = vmul.f32 %v122_v7, %v118_v51 }
  0xa1   :  { %v159_v9 = vmul.f32 2.1237322e-06, %v158_v5  ;;  %v170_v10 = vmul.f32 3.8918573e-05, %v158_v5 }
  0xa2   :  { %v135_v11 = vadd.f32 0.112945676, %v134_v8  ;;  %v124_v20 = vadd.f32 0.05243302, %v123_v14  ;;  %v114_v14 = vmul.f32 0.5, %v663_v57 }
  0xa3   :  { %v160_v12 = vadd.f32 0.00028619796, %v159_v9  ;;  %v171_v13 = vadd.f32 0.001143296, %v170_v10 }
  0xa4   :  { %v136_v15 = vmul.f32 %v135_v11, %v118_v51  ;;  %v125_v26 = vmul.f32 %v124_v20, %v118_v51 }
  0xa5   :  { %v161_v16 = vmul.f32 %v160_v12, %v158_v5  ;;  %v172_v17 = vmul.f32 %v171_v13, %v158_v5  ;;  %v113_v12 = vmul.f32 0.5, %v653_v42  ;;  %510 = vset.pattern.permute.xlu2 %v560_v6 }
  0xa6   :  { %v137_v18 = vadd.f32 0.4994258, %v136_v15  ;;  %v126_v30 = vadd.f32 0.18741608, %v125_v26  ;;  %274 = vperm.xlu2 %510, %v673_v34  }
  0xa7   :  { %v173_v19 = vadd.f32 0.014752088, %v172_v17  ;;  %v162_v21 = vadd.f32 0.0036580483, %v161_v16 }
  0xa8   :  { %v138_v22 = vmul.f32 %v137_v18, %v118_v51  ;;  %v127_v37 = vmul.f32 %v126_v30, %v118_v51 }
  0xa9   :  { %v174_v23 = vmul.f32 %v173_v19, %v158_v5  ;;  %v163_v27 = vmul.f32 %v162_v21, %v158_v5 }
  0xaa   :  { %v139_v24 = vadd.f32 1.0, %v138_v22  ;;  %v128_v44 = vadd.f32 1.1283791, %v127_v37  ;;  %v566_v37 = vmov 6  }
  0xab   :  { %v175_v25 = vadd.f32 0.112945676, %v174_v23  ;;  %v164_v31 = vadd.f32 0.05243302, %v163_v27 }
  0xac   :  { %518 = vrcp.f32 %v139_v24  ;;  %v151_v40 = vand.u32 2147483648, %v139_v24  ;;  %v149_v43 = vand.u32 2147483647, %v139_v24  ;;  %vm145_vm5 = vweird.f32 %v139_v24 }
  0xad   :  { %v176_v28 = vmul.f32 %v175_v25, %v158_v5  ;;  %v165_v38 = vmul.f32 %v164_v31, %v158_v5  ;;  %v129_v51 = vmul.f32 %v128_v44, %v658_v46 }
  0xae   :  { %v152_v49 = vor.u32 1.1754944e-38, %v151_v40  ;;  %vm150_vm7 = vcmp.eq.f32.partialorder %v149_v43, 8.507059e+37  ;;  %513 = vset.pattern.permute.xlu2 %v556_v2 }
  0xaf   :  { %v177_v29 = vadd.f32 0.4994258, %v176_v28  ;;  %v166_v45 = vadd.f32 0.18741608, %v165_v38  ;;  %v567_v38 = vmov 7  }
  0xb1   :  { %v178_v32 = vmul.f32 %v177_v29, %v158_v5  ;;  %v167_v53 = vmul.f32 %v166_v45, %v158_v5  ;;  %v201_v29 = vld [vmem:[%s734_s5] sm:$0xff] }
  0xb2   :  { %v519_v33 = vpop.eup %518 }
  0xb3   :  { %v141_v35 = vmul.f32 %v519_v33, %v139_v24  ;;  %v179_v36 = vadd.f32 1.0, %v178_v32  ;;  %vm146_vm4 = vweird.f32 %v519_v33  ;;  %v168_v61 = vadd.f32 1.1283791, %v167_v53 }
  0xb4   :  { %vm147_vm6 = vmor %vm145_vm5, %vm146_vm4 }
  0xb5   :  { %v142_v39 = vsub.f32 1.0, %v141_v35  ;;  %520 = vrcp.f32 %v179_v36  ;;  %v191_v59 = vand.u32 2147483648, %v179_v36  ;;  %v189_v63 = vand.u32 2147483647, %v179_v36 }
  0xb6   :  { %vm185_vm9 = vweird.f32 %v179_v36  ;;  %v169_v9 = vmul.f32 %v168_v61, %v666_v60 }
  0xb7   :  { %v143_v41 = vmul.f32 %v519_v33, %v142_v39  ;;  %v192_v8 = vor.u32 1.1754944e-38, %v191_v59  ;;  %vm190_vm11 = vcmp.eq.f32.partialorder %v189_v63, 8.507059e+37 }
  0xb9   :  { %v144_v48 = vadd.f32 %v519_v33, %v143_v41 }
  0xbb   :  { %v521_v50 = vpop.eup %520  ;;  %v148_v52 = vsel %vm147_vm6, %v519_v33, %v144_v48  ;;  %v202_v33 = vld [vmem:[%s735_s6] sm:$0xff] }
  0xbc   :  { %v153_v54 = vsel %vm150_vm7, %v152_v49, %v148_v52  ;;  %v181_v55 = vmul.f32 %v521_v50, %v179_v36  ;;  %vm186_vm8 = vweird.f32 %v521_v50  ;;  %v565_v36 = vmov 5  }
  0xbd   :  { %v154_v56 = vmul.f32 %v153_v54, %v129_v51  ;;  %vm187_vm10 = vmor %vm185_vm9, %vm186_vm8 }
  0xbe   :  { %v182_v58 = vsub.f32 1.0, %v181_v55 }
  0xbf   :  { %v483_v1 = vclamps-f32 %v154_v56, 1.0 }
  0xc0   :  { %v183_v62 = vmul.f32 %v521_v50, %v182_v58 }
  0xc1   :  { %v197_v11 = vadd.f32 1.0, %v483_v1 }
  0xc2   :  { %v184_v7 = vadd.f32 %v521_v50, %v183_v62 }
  0xc3   :  { %v199_v16 = vmul.f32 %v197_v11, %v113_v12 }
  0xc4   :  { %v188_v46 = vsel %vm187_vm10, %v521_v50, %v184_v7 }
  0xc5   :  { %v193_v5 = vsel %vm190_vm11, %v192_v8, %v188_v46  ;;  %v206_v60 = vmul.f32 %v199_v16, %v199_v16 }
  0xc6   :  { %v194_v10 = vmul.f32 %v193_v5, %v169_v9 }
  0xc8   :  { %v484_v13 = vclamps-f32 %v194_v10, 1.0 }
  0xca   :  { %v198_v15 = vadd.f32 1.0, %v484_v13 }
  0xcc   :  { %v200_v17 = vmul.f32 %v198_v15, %v114_v14 }
  0xce   :  { %v203_v4 = vadd.f32 %v200_v17, %v199_v16  ;;  %v207_v18 = vmul.f32 %v200_v17, %v200_v17 }
  0xd0   :  { %204 = vadd.xlane.f32.xlu0 %v203_v4  ;;  %v208_v19 = vadd.f32 %v207_v18, %v206_v60 }
  0xd2   :  { %209 = vadd.xlane.f32.xlu1 %v208_v19 }
  0xe4   :  { %284 = vperm.xlu0 %511, %v673_v34  }
  0xe6   :  { %v255_v39 = vpop.permute.xlu2 %254 }
  0xeb   :  { %294 = vperm.xlu1 %512, %v673_v34  }
  0xec   :  { %517 = vset.pattern.permute.xlu0 %v556_v2 }
  0xee   :  { %v250_v40 = vpop.permute.xlu2 %249 }
  0xf7   :  { %v265_v41 = vpop.permute.xlu2 %264 }
 0x100   :  { %v275_v43 = vpop.permute.xlu2 %274 }
 0x143   :  { %v205_v42 = vpop.xlane.xlu0 %204 }
 0x144   :  { %v211_v57 = vmul.f32 0.00390625, %v205_v42 }
 0x145   :  { %v210_v20 = vpop.xlane.xlu1 %209 }
 0x146   :  { %v213_v6 = vmul.f32 %v211_v57, %v211_v57  ;;  %v212_v21 = vmul.f32 0.00390625, %v210_v20 }
 0x148   :  { %v214_v22 = vsub.f32 %v212_v21, %v213_v6 }
 0x14a   :  { %v215_v23 = vadd.f32 1e-05, %v214_v22 }
 0x14c   :  { %522 = vrsqrt.f32 %v215_v23  ;;  %vm222_vm13 = vweird.f32 %v215_v23 }
 0x152   :  { %v523_v24 = vpop.eup %522 }
 0x153   :  { %v217_v25 = vmul.f32 %v523_v24, %v215_v23  ;;  %vm223_vm12 = vweird.f32 %v523_v24 }
 0x154   :  { %vm224_vm14 = vmor %vm222_vm13, %vm223_vm12 }
 0x155   :  { %v218_v26 = vmul.f32 %v523_v24, %v217_v25 }
 0x157   :  { %v219_v27 = vmul.f32 0.5, %v218_v26 }
 0x159   :  { %v220_v28 = vsub.f32 1.5, %v219_v27 }
 0x15b   :  { %v221_v2 = vmul.f32 %v523_v24, %v220_v28 }
 0x15d   :  { %v225_v30 = vsel %vm224_vm14, %v523_v24, %v221_v2  ;;  %v295_v4 = vpop.permute.xlu1 %294 }
 0x15e   :  { %v226_v31 = vmul.f32 %v225_v30, %v201_v29 }
 0x160   :  { %231 = vperm.xlu2 %513, %v226_v31   ;;  %v227_v32 = vmul.f32 %v226_v31, %v211_v57 }
 0x162   :  { %v228_v35 = vsub.f32 %v202_v33, %v227_v32 }
 0x168   :  { %238 = vperm.xlu2 %513, %v228_v35  }
 0x170   :  { %514 = vset.pattern.permute.xlu2 %v565_v36 }
 0x171   :  { %304 = vperm.xlu2 %514, %v673_v34  }
 0x179   :  { %515 = vset.pattern.permute.xlu2 %v566_v37 }
 0x17a   :  { %314 = vperm.xlu2 %515, %v673_v34  }
 0x182   :  { %516 = vset.pattern.permute.xlu2 %v567_v38 }
 0x183   :  { %324 = vperm.xlu2 %516, %v673_v34  }
 0x1ba   :  { %v232_v44 = vpop.permute.xlu2 %231 }
 0x1bb   :  { %v234_v45 = vmul.f32 %v232_v44, %v199_v16  ;;  %v235_v47 = vmul.f32 %v232_v44, %v200_v17 }
 0x1c2   :  { %v239_v48 = vpop.permute.xlu2 %238 }
 0x1c3   :  { %v241_v49 = vadd.f32 %v239_v48, %v234_v45  ;;  %v242_v50 = vadd.f32 %v239_v48, %v235_v47 }
 0x1c5   :  { %v243_v52 = vadd.f32 %v241_v49, %v624_v0  ;;  %v244_v51 = vadd.f32 %v242_v50, %v634_v3  ;;  %v285_v3 = vpop.permute.xlu0 %284 }
 0x1c7   :  { %v257_v53 = vperm.slane %v243_v52, 0  ;;  %v258_v54 = vperm.slane %v244_v51, 0  ;;  %v267_v55 = vperm.slane %v243_v52, 1  ;;  %v268_v56 = vperm.slane %v244_v51, 1 }
 0x1c8   :  { %v277_v59 = vperm.slane %v243_v52, 2  ;;  %v278_v61 = vperm.slane %v244_v51, 2  ;;  %v287_v9 = vperm.slane %v243_v52, 3  ;;  %v288_v46 = vperm.slane %v244_v51, 3 }
 0x1c9   :  { %v259_v58 = vmul.f32 %v257_v53, %v255_v39  ;;  %v260_v34 = vmul.f32 %v258_v54, %v255_v39  ;;  %v269_v1 = vmul.f32 %v267_v55, %v265_v41  ;;  %v270_v7 = vmul.f32 %v268_v56, %v265_v41 }
 0x1ca   :  { %v279_v0 = vmul.f32 %v277_v59, %v275_v43  ;;  %v280_v11 = vmul.f32 %v278_v61, %v275_v43  ;;  %v297_v14 = vperm.slane %v243_v52, 4  ;;  %v298_v15 = vperm.slane %v244_v51, 4 }
 0x1cb   :  { %v261_v62 = vadd.f32 %v259_v58, %v250_v40  ;;  %v262_v63 = vadd.f32 %v260_v34, %v250_v40  ;;  %v305_v8 = vpop.permute.xlu2 %304  ;;  %v289_v16 = vmul.f32 %v287_v9, %v285_v3  ;;  %v290_v17 = vmul.f32 %v288_v46, %v285_v3 }
 0x1cc   :  { %v299_v19 = vmul.f32 %v297_v14, %v295_v4  ;;  %v300_v42 = vmul.f32 %v298_v15, %v295_v4  ;;  %v307_v20 = vperm.slane %v243_v52, 5  ;;  %v308_v6 = vperm.slane %v244_v51, 5 }
 0x1cd   :  { %v271_v5 = vadd.f32 %v269_v1, %v261_v62  ;;  %v272_v10 = vadd.f32 %v270_v7, %v262_v63  ;;  %v317_v25 = vperm.slane %v243_v52, 6  ;;  %v318_v26 = vperm.slane %v244_v51, 6 }
 0x1ce   :  { %v309_v23 = vmul.f32 %v307_v20, %v305_v8  ;;  %v310_v24 = vmul.f32 %v308_v6, %v305_v8  ;;  %v327_v30 = vperm.slane %v243_v52, 7  ;;  %v328_v31 = vperm.slane %v244_v51, 7 }
 0x1cf   :  { %v281_v12 = vadd.f32 %v279_v0, %v271_v5  ;;  %v282_v13 = vadd.f32 %v280_v11, %v272_v10 }
 0x1d1   :  { %v291_v60 = vadd.f32 %v289_v16, %v281_v12  ;;  %v292_v18 = vadd.f32 %v290_v17, %v282_v13 }
 0x1d3   :  { %v301_v21 = vadd.f32 %v299_v19, %v291_v60  ;;  %v302_v22 = vadd.f32 %v300_v42, %v292_v18 }
 0x1d4   :  { %v315_v57 = vpop.permute.xlu2 %314 }
 0x1d5   :  { %v311_v27 = vadd.f32 %v309_v23, %v301_v21  ;;  %v312_v28 = vadd.f32 %v310_v24, %v302_v22  ;;  %v319_v29 = vmul.f32 %v317_v25, %v315_v57  ;;  %v320_v2 = vmul.f32 %v318_v26, %v315_v57 }
 0x1d7   :  { %v321_v33 = vadd.f32 %v319_v29, %v311_v27  ;;  %v322_v35 = vadd.f32 %v320_v2, %v312_v28 }
 0x1dd   :  { %v325_v32 = vpop.permute.xlu2 %324 }
 0x1de   :  { %v329_v36 = vmul.f32 %v327_v30, %v325_v32  ;;  %v330_v37 = vmul.f32 %v328_v31, %v325_v32 }
 0x1e0   :  { %v702_v38 = vadd.f32 %v329_v36, %v321_v33  ;;  %v704_v39 = vadd.f32 %v330_v37, %v322_v35 }
 0x1e2   :  { %v707_v40 = vmul.f32 0.70710677, %v702_v38  ;;  %v710_v41 = vmul.f32 0.70710677, %v704_v39 }
 0x1e4   :  { %v337_v43 = vmul.f32 %v707_v40, %v707_v40  ;;  %v377_v44 = vmul.f32 %v710_v41, %v710_v41 }
 0x1e6   :  { %v338_v45 = vmin.f32 %v337_v43, 16.0  ;;  %v378_v47 = vmin.f32 %v377_v44, 16.0 }
 0x1e8   :  { %v339_v48 = vmul.f32 2.1237322e-06, %v338_v45  ;;  %v379_v49 = vmul.f32 2.1237322e-06, %v378_v47  ;;  %v350_v50 = vmul.f32 3.8918573e-05, %v338_v45 }
 0x1e9   :  { %v390_v52 = vmul.f32 3.8918573e-05, %v378_v47 }
 0x1ea   :  { %v340_v51 = vadd.f32 0.00028619796, %v339_v48  ;;  %v380_v53 = vadd.f32 0.00028619796, %v379_v49  ;;  %v351_v54 = vadd.f32 0.001143296, %v350_v50 }
 0x1eb   :  { %v391_v55 = vadd.f32 0.001143296, %v390_v52 }
 0x1ec   :  { %v341_v56 = vmul.f32 %v340_v51, %v338_v45  ;;  %v381_v58 = vmul.f32 %v380_v53, %v378_v47  ;;  %v352_v34 = vmul.f32 %v351_v54, %v338_v45  ;;  %v333_v54 = vmul.f32 0.5, %v702_v38 }
 0x1ed   :  { %v392_v59 = vmul.f32 %v391_v55, %v378_v47 }
 0x1ee   :  { %v342_v61 = vadd.f32 0.0036580483, %v341_v56  ;;  %v353_v62 = vadd.f32 0.014752088, %v352_v34  ;;  %v382_v1 = vadd.f32 0.0036580483, %v381_v58 }
 0x1ef   :  { %v393_v63 = vadd.f32 0.014752088, %v392_v59  ;;  %v334_v56 = vmul.f32 0.5, %v704_v39 }
 0x1f0   :  { %v354_v7 = vmul.f32 %v353_v62, %v338_v45  ;;  %v343_v9 = vmul.f32 %v342_v61, %v338_v45  ;;  %v383_v10 = vmul.f32 %v382_v1, %v378_v47 }
 0x1f1   :  { %v394_v8 = vmul.f32 %v393_v63, %v378_v47 }
 0x1f2   :  { %v355_v46 = vadd.f32 0.112945676, %v354_v7  ;;  %v344_v3 = vadd.f32 0.05243302, %v343_v9  ;;  %v384_v14 = vadd.f32 0.05243302, %v383_v10 }
 0x1f3   :  { %v395_v5 = vadd.f32 0.112945676, %v394_v8 }
 0x1f4   :  { %v356_v0 = vmul.f32 %v355_v46, %v338_v45  ;;  %v345_v17 = vmul.f32 %v344_v3, %v338_v45  ;;  %v385_v18 = vmul.f32 %v384_v14, %v378_v47  ;;  %v421_v3 = vld [vmem:[%s736_s7] sm:$0xff]  ;;  %s569_s7 = smov 128  }
 0x1f5   :  { %v396_v11 = vmul.f32 %v395_v5, %v378_v47 }
 0x1f6   :  { %v357_v12 = vadd.f32 0.4994258, %v356_v0  ;;  %v346_v19 = vadd.f32 0.18741608, %v345_v17  ;;  %v386_v42 = vadd.f32 0.18741608, %v385_v18 }
 0x1f7   :  { %v397_v13 = vadd.f32 0.4994258, %v396_v11 }
 0x1f8   :  { %v358_v15 = vmul.f32 %v357_v12, %v338_v45  ;;  %v347_v20 = vmul.f32 %v346_v19, %v338_v45  ;;  %v387_v22 = vmul.f32 %v386_v42, %v378_v47 }
 0x1f9   :  { %v398_v16 = vmul.f32 %v397_v13, %v378_v47 }
 0x1fa   :  { %v359_v4 = vadd.f32 1.0, %v358_v15  ;;  %v348_v25 = vadd.f32 1.1283791, %v347_v20  ;;  %v388_v30 = vadd.f32 1.1283791, %v387_v22 }
 0x1fb   :  { %v399_v60 = vadd.f32 1.0, %v398_v16  ;;  %v422_v16 = vld [vmem:[%s737_s8] sm:$0xff]  ;;  %s570_s8 = smov 8  }
 0x1fc   :  { %524 = vrcp.f32 %v359_v4  ;;  %v371_v26 = vand.u32 2147483648, %v359_v4  ;;  %v369_v29 = vand.u32 2147483647, %v359_v4  ;;  %vm365_vm1 = vweird.f32 %v359_v4 }
 0x1fd   :  { %526 = vrcp.f32 %v399_v60  ;;  %v411_v2 = vand.u32 2147483648, %v399_v60  ;;  %v409_v32 = vand.u32 2147483647, %v399_v60  ;;  %vm405_vm3 = vweird.f32 %v399_v60 }
 0x1fe   :  { %v372_v35 = vor.u32 1.1754944e-38, %v371_v26  ;;  %v349_v37 = vmul.f32 %v348_v25, %v707_v40  ;;  %vm370_vm4 = vcmp.eq.f32.partialorder %v369_v29, 8.507059e+37  ;;  %v389_v45 = vmul.f32 %v388_v30, %v710_v41 }
 0x1ff   :  { %v412_v44 = vor.u32 1.1754944e-38, %v411_v2  ;;  %vm410_vm6 = vcmp.eq.f32.partialorder %v409_v32, 8.507059e+37 }
 0x202   :  { %v525_v57 = vpop.eup %524 }
 0x203   :  { %v527_v6 = vpop.eup %526  ;;  %v361_v21 = vmul.f32 %v525_v57, %v359_v4  ;;  %vm366_vm15 = vweird.f32 %v525_v57 }
 0x204   :  { %v401_v23 = vmul.f32 %v527_v6, %v399_v60  ;;  %vm406_vm0 = vweird.f32 %v527_v6  ;;  %vm367_vm2 = vmor %vm365_vm1, %vm366_vm15 }
 0x205   :  { %v362_v24 = vsub.f32 1.0, %v361_v21  ;;  %vm407_vm5 = vmor %vm405_vm3, %vm406_vm0 }
 0x206   :  { %v402_v27 = vsub.f32 1.0, %v401_v23 }
 0x207   :  { %v363_v28 = vmul.f32 %v525_v57, %v362_v24 }
 0x208   :  { %v403_v31 = vmul.f32 %v527_v6, %v402_v27 }
 0x209   :  { %v364_v33 = vadd.f32 %v525_v57, %v363_v28 }
 0x20a   :  { %v404_v36 = vadd.f32 %v527_v6, %v403_v31 }
 0x20b   :  { %v368_v43 = vsel %vm367_vm2, %v525_v57, %v364_v33 }
 0x20c   :  { %v373_v47 = vsel %vm370_vm4, %v372_v35, %v368_v43  ;;  %v408_v48 = vsel %vm407_vm5, %v527_v6, %v404_v36 }
 0x20d   :  { %v374_v49 = vmul.f32 %v373_v47, %v349_v37  ;;  %v413_v50 = vsel %vm410_vm6, %v412_v44, %v408_v48 }
 0x20e   :  { %v414_v52 = vmul.f32 %v413_v50, %v389_v45 }
 0x20f   :  { %v485_v51 = vclamps-f32 %v374_v49, 1.0 }
 0x210   :  { %v486_v53 = vclamps-f32 %v414_v52, 1.0 }
 0x211   :  { %v417_v55 = vadd.f32 1.0, %v485_v51 }
 0x212   :  { %v418_v40 = vadd.f32 1.0, %v486_v53 }
 0x213   :  { %v419_v58 = vmul.f32 %v417_v55, %v333_v54 }
 0x214   :  { %v420_v34 = vmul.f32 %v418_v40, %v334_v56 }
 0x215   :  { %v426_v59 = vmul.f32 %v419_v58, %v419_v58 }
 0x216   :  { %v423_v61 = vadd.f32 %v420_v34, %v419_v58  ;;  %v427_v62 = vmul.f32 %v420_v34, %v420_v34 }
 0x218   :  { %424 = vadd.xlane.f32.xlu1 %v423_v61  ;;  %v428_v41 = vadd.f32 %v427_v62, %v426_v59 }
 0x21a   :  { %429 = vadd.xlane.f32.xlu2 %v428_v41 }
 0x28b   :  { %v425_v63 = vpop.xlane.xlu1 %424 }
 0x28c   :  { %v431_v1 = vmul.f32 0.00390625, %v425_v63 }
 0x28d   :  { %v430_v7 = vpop.xlane.xlu2 %429 }
 0x28e   :  { %v433_v8 = vmul.f32 %v431_v1, %v431_v1  ;;  %v432_v9 = vmul.f32 0.00390625, %v430_v7 }
 0x290   :  { %v434_v46 = vsub.f32 %v432_v9, %v433_v8 }
 0x292   :  { %v435_v5 = vadd.f32 1e-05, %v434_v46 }
 0x294   :  { %528 = vrsqrt.f32 %v435_v5  ;;  %vm442_vm8 = vweird.f32 %v435_v5 }
 0x29a   :  { %v529_v38 = vpop.eup %528 }
 0x29b   :  { %v437_v10 = vmul.f32 %v529_v38, %v435_v5  ;;  %vm443_vm7 = vweird.f32 %v529_v38 }
 0x29c   :  { %vm444_vm9 = vmor %vm442_vm8, %vm443_vm7 }
 0x29d   :  { %v438_v39 = vmul.f32 %v529_v38, %v437_v10 }
 0x29f   :  { %v439_v0 = vmul.f32 0.5, %v438_v39 }
 0x2a1   :  { %v440_v11 = vsub.f32 1.5, %v439_v0 }
 0x2a3   :  { %v441_v12 = vmul.f32 %v529_v38, %v440_v11 }
 0x2a5   :  { %v445_v13 = vsel %vm444_vm9, %v529_v38, %v441_v12 }
 0x2a6   :  { %v446_v14 = vmul.f32 %v445_v13, %v421_v3 }
 0x2a8   :  { %451 = vperm.xlu0 %517, %v446_v14   ;;  %v447_v15 = vmul.f32 %v446_v14, %v431_v1 }
 0x2aa   :  { %v448_v17 = vsub.f32 %v422_v16, %v447_v15 }
 0x2b0   :  { %458 = vperm.xlu0 %517, %v448_v17  }
 0x31a   :  { %v452_v4 = vpop.permute.xlu0 %451 }
 0x31b   :  { %v454_v60 = vmul.f32 %v452_v4, %v419_v58  ;;  %v455_v18 = vmul.f32 %v452_v4, %v420_v34 }
 0x322   :  { %v459_v19 = vpop.permute.xlu0 %458 }
 0x323   :  { %v461_v42 = vadd.f32 %v459_v19, %v454_v60  ;;  %v462_v57 = vadd.f32 %v459_v19, %v455_v18 }
 0x325   :  { %463 = vst [vmem:[#allocation2] sm:$0xff] %v461_v42 }
 0x326   :  { %464 = vst [vmem:[#allocation2 + $0x8] sm:$0xff] %v462_v57 }
 0x327   :  { %477 = dma.vmem_to_hbm [thread:$0]  %s470_s27, 256, %s472_s30, [#allocation3], %s569_s7, %s569_s7, %s570_s8  }
 0x328   :  { %554 = dma.done.wait [#allocation3], 256  }
 0x329   :  { %555 = vsyncadd [#allocation3], 4294967040 }
 0x32a   :  { %482 = vsyncpa [#allocation3], 1 }

</bundles_post_ra>
